<compile_context>
chip_gen: v6e
topology: v6e:2x2x1
jax: 0.10.0
libtpu: 0.0.40
codegen_flags: <defaults>
</compile_context>

<pallas_src>
import functools

import jax
import jax.numpy as jnp
from jax.experimental import pallas as pl
from jax.experimental.pallas import tpu as pltpu


_LANES = 128


def _fake_quant_kernel(x_ref, o_ref, *, scale, inv_scale, qmin_z, qmax_z):
    # f32 math (torch fake-quantizes in fp32) even for bf16/f16 data; the
    # downcast back to the tensor dtype happens at the store.
    x = x_ref[...].astype(jnp.float32)
    q = jnp.clip(jnp.round(x * inv_scale), qmin_z, qmax_z)
    o_ref[...] = (q * scale).astype(o_ref.dtype)


def _sublane_align(itemsize):
    # Packed min-tile second-minor dim: 8 rows for 4B, 16 for 2B, 32 for 1B.
    return max(8, 32 // int(itemsize))


def _target_block_bytes():
    """Per-generation block-byte target for this pure HBM-streaming kernel."""
    try:
        vmem_cap = int(pltpu.get_tpu_info().vmem_capacity_bytes)
    except Exception:  # query unavailable -> be conservative (v7x-sized VMEM)
        vmem_cap = 64 << 20
    if vmem_cap >= (96 << 20):     # v5e / v6e: 128 MiB physical VMEM
        return 8 << 20
    return 6 << 20                 # v7x: 64 MiB physical VMEM per TensorCore


def _pick_row_tile(rows, cols, itemsize, align, target_bytes):
    """Sublane-aligned row tile: big blocks, but >=4 grid steps when possible."""
    if rows < 4 * align:
        return rows                                  # tiny: one full-extent block
    max_rows = max(align, (target_bytes // (cols * itemsize)) // align * align)
    quarter = max(align, (rows // 4) // align * align)  # >=4 steps (2 per v7x TC)
    return min(max_rows, quarter)


class FixedQParamsFakeQuantize:
    """JAX/Pallas port of nncs FixedQParamsFakeQuantize (per-tensor affine)."""

    def __init__(self, scale, zero_point, quant_min=0, quant_max=255):
        assert quant_min <= quant_max, \
            "quant_min should be less than or equal to quant_max"
        # Clamp bounds are carried as f32 inside the kernel; keep them exact.
        assert (quant_max - quant_min) < (1 << 24), \
            "quant range too wide for exact f32 clamp bounds"
        # qparams are baked in as compile-time constants (they are "fixed" by
        # construction); changing them triggers recompilation.
        self.scale = float(scale)
        self.zero_point = int(zero_point)
        self.quant_min = int(quant_min)
        self.quant_max = int(quant_max)
        self.fake_quant_enabled = True
        # TODO(synk): observer_enabled / observer_opened buffers have no effect
        # on the forward pass of this module; omitted from the kernel.

    def calculate_qparams(self):
        return (jnp.array([self.scale], dtype=jnp.float32),
                jnp.array([self.zero_point], dtype=jnp.int32))

    def __call__(self, x):
        if not self.fake_quant_enabled:
            return x
        return self._fake_quantize(x)

    # ---- internals --------------------------------------------------------

    def _qparams(self):
        return dict(scale=self.scale,
                    inv_scale=1.0 / self.scale,
                    qmin_z=float(self.quant_min - self.zero_point),
                    qmax_z=float(self.quant_max - self.zero_point))

    def _xla_fake_quant(self, x):
        """Plain-XLA fallback for tiny / ragged tails (same folded math)."""
        p = self._qparams()
        q = jnp.clip(jnp.round(x.astype(jnp.float32) * p["inv_scale"]),
                     p["qmin_z"], p["qmax_z"])
        return (q * p["scale"]).astype(x.dtype)

    def _run_kernel_2d(self, x2d):
        rows, cols = x2d.shape
        itemsize = x2d.dtype.itemsize
        align = _sublane_align(itemsize)
        target = _target_block_bytes()
        row_tile = _pick_row_tile(rows, cols, itemsize, align, target)
        block_bytes = row_tile * cols * itemsize
        # 2 double-buffered input blocks + 2 output blocks + headroom,
        # always well under v7x's 64 MiB physical VMEM.
        vmem_limit = min(max(4 * block_bytes + (8 << 20), 32 << 20), 64 << 20)

        n = rows * cols
        kernel = functools.partial(_fake_quant_kernel, **self._qparams())

        return pl.pallas_call(
            kernel,
            out_shape=jax.ShapeDtypeStruct((rows, cols), x2d.dtype),
            grid_spec=pltpu.PrefetchScalarGridSpec(
                num_scalar_prefetch=0,
                grid=(pl.cdiv(rows, row_tile),),
                in_specs=[pl.BlockSpec((row_tile, cols), lambda i: (i, 0))],
                out_specs=pl.BlockSpec((row_tile, cols), lambda i: (i, 0)),
            ),
            compiler_params=pltpu.CompilerParams(
                dimension_semantics=("parallel",),
                vmem_limit_bytes=int(vmem_limit),
            ),
            cost_estimate=pl.CostEstimate(
                flops=5 * n,
                transcendentals=0,
                bytes_accessed=2 * n * itemsize,
            ),
        )(x2d)

    def _fake_quantize(self, x):
        orig_shape = x.shape
        n = x.size
        if n == 0:
            return x
        itemsize = jnp.dtype(x.dtype).itemsize
        align = _sublane_align(itemsize)
        target = _target_block_bytes()

        cols_native = orig_shape[-1] if x.ndim >= 1 else n
        rows_native = n // cols_native

        # (a) Last dim already lane-aligned: tile the array directly as a
        #     (collapsed-leading-dims, last-dim) lane-dense slab (free,
        #     row-major reshape; lane width >= 128 -> unmasked vst).
        if (cols_native % _LANES == 0
                and cols_native * itemsize * align <= target
                and (rows_native >= 4 * align
                     or rows_native * cols_native * itemsize <= target)):
            out = self._run_kernel_2d(x.reshape(rows_native, cols_native))
            return out.reshape(orig_shape)

        # (b) Total numel lane-aligned: free row-major reshape to (rows, 128).
        if n % _LANES == 0:
            out = self._run_kernel_2d(x.reshape(n // _LANES, _LANES))
            return out.reshape(orig_shape)

        # (c) Ragged: kernel on the 128-aligned prefix; the <128-element tail
        #     goes through plain XLA.  No full-tensor pad / slice round trips.
        n_aligned = (n // _LANES) * _LANES
        if n_aligned == 0:
            return self._xla_fake_quant(x)
        xf = x.reshape(-1)
        head = self._run_kernel_2d(
            xf[:n_aligned].reshape(n_aligned // _LANES, _LANES)).reshape(-1)
        tail = self._xla_fake_quant(xf[n_aligned:])
        return jnp.concatenate([head, tail]).reshape(orig_shape)


def _reference(x, scale, zero_point, quant_min, quant_max):
    # Matches ATen: multiply by precomputed inv_scale (not divide by scale).
    q = jnp.round(x.astype(jnp.float32) * (1.0 / scale)) + zero_point
    q = jnp.clip(q, quant_min, quant_max)
    return ((q - zero_point) * scale).astype(x.dtype)


if __name__ == "__main__":
    key = jax.random.PRNGKey(0)
    k0, k1, k2 = jax.random.split(key, 3)

    module = FixedQParamsFakeQuantize(
        scale=2.0 / 255.0, zero_point=128, quant_min=0, quant_max=255
    )

    # Conv-style NCHW activation (numel % 128 == 0, last dim not aligned).
    x0 = jax.random.normal(k0, (2, 4, 16, 16), dtype=jnp.float32) * 2.0
    y0 = jax.block_until_ready(module(x0))
    r0 = _reference(x0, module.scale, module.zero_point,
                    module.quant_min, module.quant_max)
    assert y0.shape == x0.shape and y0.dtype == x0.dtype
    assert jnp.allclose(y0, r0, atol=1e-6, rtol=0)

    # bf16 activation with lane-aligned last dim (native-cols path, 16-row
    # sublane alignment).
    x1 = (jax.random.normal(k1, (2, 8, 256), dtype=jnp.float32) * 2.0
          ).astype(jnp.bfloat16)
    y1 = jax.block_until_ready(module(x1))
    r1 = _reference(x1, module.scale, module.zero_point,
                    module.quant_min, module.quant_max)
    assert y1.shape == x1.shape and y1.dtype == x1.dtype
    assert jnp.allclose(y1.astype(jnp.float32), r1.astype(jnp.float32),
                        atol=1e-2, rtol=0)

    # Ragged tensor (numel not a multiple of 128) exercises prefix+tail path.
    x2 = jax.random.normal(k2, (3, 7, 13), dtype=jnp.float32)
    y2 = jax.block_until_ready(module(x2))
    r2 = _reference(x2, module.scale, module.zero_point,
                    module.quant_min, module.quant_max)
    assert y2.shape == x2.shape and y2.dtype == x2.dtype
    assert jnp.allclose(y2, r2, atol=1e-6, rtol=0)

    print("KERNEL_OK")
</pallas_src>

<mosaic_0001>
module attributes {stable_mosaic.version = 11 : i64} {
  func.func @_fake_quant_kernel(%arg0: i32, %arg1: memref<16x128xf32, #tpu.memory_space<vmem>>, %arg2: memref<16x128xf32, #tpu.memory_space<vmem>>) attributes {dimension_semantics = [#tpu.dimension_semantics<parallel>], iteration_bounds = array<i64: 1>, scalar_prefetch = 0 : i64, scratch_operands = 0 : i64, tpu.core_type = #tpu.core_type<tc>, window_params = [{transform_indices = @transform_0, window_bounds = array<i64: 16, 128>}, {transform_indices = @transform_1, window_bounds = array<i64: 16, 128>}]} {
    %c0 = arith.constant 0 : index
    %c0_0 = arith.constant 0 : index
    %0 = vector.load %arg1[%c0, %c0_0] : memref<16x128xf32, #tpu.memory_space<vmem>>, vector<16x128xf32>
    %cst = arith.constant 1.275000e+02 : f32
    %1 = vector.broadcast %cst : f32 to vector<16x128xf32>
    %2 = arith.mulf %0, %1 : vector<16x128xf32>
    %3 = math.roundeven %2 : vector<16x128xf32>
    %cst_1 = arith.constant -1.280000e+02 : f32
    %cst_2 = arith.constant 1.270000e+02 : f32
    %4 = vector.broadcast %cst_1 : f32 to vector<16x128xf32>
    %5 = arith.maximumf %4, %3 : vector<16x128xf32>
    %6 = vector.broadcast %cst_2 : f32 to vector<16x128xf32>
    %7 = arith.minimumf %6, %5 : vector<16x128xf32>
    %cst_3 = arith.constant 0.00784313772 : f32
    %8 = vector.broadcast %cst_3 : f32 to vector<16x128xf32>
    %9 = arith.mulf %7, %8 : vector<16x128xf32>
    %c0_4 = arith.constant 0 : index
    %c0_5 = arith.constant 0 : index
    %10 = vector.load %arg2[%c0_4, %c0_5] : memref<16x128xf32, #tpu.memory_space<vmem>>, vector<16x128xf32>
    tpu.vector_store %arg2[%c0_4, %c0_5], %9 {strides = array<i32>} : memref<16x128xf32, #tpu.memory_space<vmem>>, vector<16x128xf32>,
    return
  }
  func.func @transform_0(%arg0: i32) -> (i32, i32) {
    %c0_i32 = arith.constant 0 : i32
    %c0_i32_0 = arith.constant 0 : i32
    return %arg0, %c0_i32 : i32, i32
  }
  func.func @transform_1(%arg0: i32) -> (i32, i32) {
    %c0_i32 = arith.constant 0 : i32
    %c0_i32_0 = arith.constant 0 : i32
    return %arg0, %c0_i32 : i32, i32
  }
}

</mosaic_0001>

<bundles_post_ra>
// kernel: tpu_custom_call.1
= control target key start
LH: loop header
LB: loop body
LE: loop exit
PB: predicated region body
PF: predicated region fallthrough
CT: control target
= control target key end

     0   :  { %6 = vsyncpa [#allocation3], 0  ;;  %s144_s0 = inlined_call_operand.hbm [shape: f32[16,128], index: 0, kind: input, shape index: {}]   ;;  %s145_s1 = inlined_call_operand.hbm [shape: f32[16,128], index: 1, kind: output, shape index: {}]  }
   0x1   :  { %7 = vsyncpa [#allocation4], 0  ;;  %s118_s6 = smov [#allocation2]  }
   0x2   :  { %s13_s7 = sshll.u32 %s118_s6, 4  ;;  %s14_s7 = int_to_ptr.vmem [resolvable:$true] %s13_s7 }
   0x3   :  { %s82_s8 = scalar_lea.vmem %s14_s7, 256  ;;  %p87_p1 = scmp.lt.s32.totalorder %s14_s7, %s14_s7 }
   0x4   :  { %p83_p0 = scmp.ne.s32.totalorder %s14_s7, %s82_s8  ;;  %p88_p2 = scmp.lt.s32.totalorder %s82_s8, %s82_s8 }
   0x6   :  { %p89_p3 = por %p88_p2, %p87_p1 }
   0x8   :  { %p90_p4 = pnand %p89_p3, %p83_p0 }
   0xa   :  { %93 = shalt.err (!%p90_p4)
}
   0xb   :  { %s119_s9 = smov 128   ;;  %s120_s10 = smov 8  }
   0xc   :  { %19 = dma.hbm_to_vmem [thread:$0]  %s144_s0, 256, %s14_s7, [#allocation3], %s119_s9, %s119_s9, %s120_s10  }
   0xd   :  { %114 = dma.done.wait [#allocation3], 256  }
   0xe   :  { %115 = vsyncadd [#allocation3], 4294967040  ;;  %v23_v0 = vld [vmem:[#allocation2] sm:$0xff]  ;;  %v24_v1 = vld [vmem:[#allocation2 + $0x8] sm:$0xff]  ;;  %s121_s0 = smov [#allocation5]  }
   0xf   :  { %v25_v2 = vmul.f32 127.5, %v23_v0  ;;  %v26_v3 = vmul.f32 127.5, %v24_v1  ;;  %s42_s13 = sshll.u32 %s121_s0, 4  ;;  %s43_s13 = int_to_ptr.vmem [resolvable:$true] %s42_s13 }
  0x10   :  { %s94_s14 = scalar_lea.vmem %s43_s13, 256  ;;  %p99_p6 = scmp.lt.s32.totalorder %s43_s13, %s43_s13 }
  0x11   :  { %v56_v4 = vcvt.f32.s32 %v25_v2  ;;  %v54_v5 = vand.u32 2147483647, %v25_v2  ;;  %v64_v6 = vcvt.f32.s32 %v26_v3  ;;  %v59_v8 = vand.u32 2147483648, %v25_v2  ;;  %p95_p5 = scmp.ne.s32.totalorder %s43_s13, %s94_s14  ;;  %p100_p7 = scmp.lt.s32.totalorder %s94_s14, %s94_s14 }
  0x12   :  { %v62_v9 = vand.u32 2147483647, %v26_v3  ;;  %v67_v11 = vand.u32 2147483648, %v26_v3 }
  0x13   :  { %v57_v7 = vcvt.s32.f32 %v56_v4  ;;  %v65_v10 = vcvt.s32.f32 %v64_v6  ;;  %vm55_vm0 = vcmp.lt.f32.partialorder %v54_v5, 8388608.0  ;;  %p101_p8 = por %p100_p7, %p99_p6 }
  0x14   :  { %vm63_vm1 = vcmp.lt.f32.partialorder %v62_v9, 8388608.0 }
  0x15   :  { %v58_v12 = vand.u32 2147483647, %v57_v7  ;;  %v66_v13 = vand.u32 2147483647, %v65_v10  ;;  %p102_p9 = pnand %p101_p8, %p95_p5 }
  0x17   :  { %v60_v14 = vor.u32 %v59_v8, %v58_v12  ;;  %v68_v15 = vor.u32 %v67_v11, %v66_v13 }
  0x19   :  { %v61_v16 = vsel %vm55_vm0, %v60_v14, %v25_v2  ;;  %v69_v18 = vsel %vm63_vm1, %v68_v15, %v26_v3 }
  0x1a   :  { %v29_v17 = vmax.f32 %v61_v16, -128.0  ;;  %v30_v19 = vmax.f32 %v69_v18, -128.0 }
  0x1c   :  { %v31_v20 = vmin.f32 %v29_v17, 127.0  ;;  %v32_v21 = vmin.f32 %v30_v19, 127.0 }
  0x1e   :  { %v33_v22 = vmul.f32 0.007843138, %v31_v20  ;;  %v34_v23 = vmul.f32 0.007843138, %v32_v21 }
  0x20   :  { %35 = vst [vmem:[#allocation5] sm:$0xff] %v33_v22  ;;  %36 = vst [vmem:[#allocation5 + $0x8] sm:$0xff] %v34_v23 }
  0x21   :  { %105 = shalt.err (!%p102_p9)
}
  0x22   :  { %48 = dma.vmem_to_hbm [thread:$0]  %s43_s13, 256, %s145_s1, [#allocation4], %s119_s9, %s119_s9, %s120_s10  }
  0x23   :  { %116 = dma.done.wait [#allocation4], 256  }
  0x24   :  { %117 = vsyncadd [#allocation4], 4294967040 }
  0x25   :  { %52 = vsyncpa [#allocation3], 1 }
  0x26   :  { %53 = vsyncpa [#allocation4], 1 }

</bundles_post_ra>
